<compile_context>
chip_gen: v5e
topology: v5e:2x2
jax: 0.10.0
libtpu: 0.0.40
codegen_flags: <defaults>
</compile_context>

<pallas_src>
import functools

import jax
import jax.numpy as jnp
from jax.experimental import pallas as pl
from jax.experimental.pallas import tpu as pltpu

_LANE = 128


def _round_up(n, m):
    return ((n + m - 1) // m) * m


# ----------------------------------------------------------------------------
# Kernel
# ----------------------------------------------------------------------------
def _dqn_kernel(x_ref,
                w1_ref, b1_ref,
                w2_ref, b2_ref,
                w3_ref, b3_ref,
                w4_ref, b4_ref,
                o_ref):
    x = x_ref[...]                                             # bf16 [TB, in]

    h = jnp.dot(x, w1_ref[...], preferred_element_type=jnp.float32) + b1_ref[...]
    h = jnp.maximum(h, 0.0).astype(jnp.bfloat16)

    h = jnp.dot(h, w2_ref[...], preferred_element_type=jnp.float32) + b2_ref[...]
    h = jnp.maximum(h, 0.0).astype(jnp.bfloat16)

    h = jnp.dot(h, w3_ref[...], preferred_element_type=jnp.float32) + b3_ref[...]
    h = jnp.maximum(h, 0.0).astype(jnp.bfloat16)

    out = jnp.dot(h, w4_ref[...], preferred_element_type=jnp.float32) + b4_ref[...]
    o_ref[...] = out.astype(o_ref.dtype)                       # f32 [TB, 128*]


# ----------------------------------------------------------------------------
# Wrapper
# ----------------------------------------------------------------------------
def _pad_params(params):
    """Zero-pad hidden / action dims to multiples of 128 lanes; weights -> bf16."""
    def pad_w(w, rows, cols):
        return jnp.pad(w, ((0, rows - w.shape[0]), (0, cols - w.shape[1])))

    def pad_b(b, cols):
        return jnp.pad(b, ((0, 0), (0, cols - b.shape[1])))

    in_dim, hidden = params["w1"].shape
    num_actions = params["w4"].shape[1]
    hp = _round_up(hidden, _LANE)
    ap = _round_up(num_actions, _LANE)

    padded = dict(
        w1=pad_w(params["w1"], in_dim, hp).astype(jnp.bfloat16),
        b1=pad_b(params["b1"], hp),
        w2=pad_w(params["w2"], hp, hp).astype(jnp.bfloat16),
        b2=pad_b(params["b2"], hp),
        w3=pad_w(params["w3"], hp, hp).astype(jnp.bfloat16),
        b3=pad_b(params["b3"], hp),
        w4=pad_w(params["w4"], hp, ap).astype(jnp.bfloat16),
        b4=pad_b(params["b4"], ap),
    )
    return padded, num_actions, hp, ap


@functools.partial(jax.jit, static_argnames=("block_b",))
def dqn_forward(x, params, *, block_b=1024):
    """x: [B, obs_space + state_space] f32.  params: dict of f32 (w, b) pairs
    with weights stored [in, out] (transposed vs. PyTorch nn.Linear)."""
    B, in_dim = x.shape
    pp, num_actions, hp, ap = _pad_params(params)

    # Batch tile: multiple of 16 (bf16 sublane packing), capped at block_b.
    tb = max(16, min(block_b, _round_up(B, 16)))
    b_pad = _round_up(B, tb)

    x_bf16 = x.astype(jnp.bfloat16)
    if b_pad != B:
        x_bf16 = jnp.pad(x_bf16, ((0, b_pad - B), (0, 0)))

    grid = (b_pad // tb,)

    def resident2d(shape):
        # Same block every grid step -> DMA'd once, VMEM-resident.
        return pl.BlockSpec(shape, lambda i: (0, 0))

    in_specs = [
        pl.BlockSpec((tb, in_dim), lambda i: (i, 0)),          # streaming x tiles
        resident2d(pp["w1"].shape), resident2d(pp["b1"].shape),
        resident2d(pp["w2"].shape), resident2d(pp["b2"].shape),
        resident2d(pp["w3"].shape), resident2d(pp["b3"].shape),
        resident2d(pp["w4"].shape), resident2d(pp["b4"].shape),
    ]
    out_spec = pl.BlockSpec((tb, ap), lambda i: (i, 0))        # lane-dense output

    args = (x_bf16,
            pp["w1"], pp["b1"], pp["w2"], pp["b2"],
            pp["w3"], pp["b3"], pp["w4"], pp["b4"])

    flops = 2 * b_pad * (in_dim * hp + 2 * hp * hp + hp * ap)
    bytes_accessed = int(sum(a.size * a.dtype.itemsize for a in args)
                         + b_pad * ap * 4)

    # VMEM budget: double-buffered x/out tiles + resident weights/biases.
    tile_bytes = 2 * (tb * in_dim * 2 + tb * ap * 4)
    weight_bytes = sum(v.size * v.dtype.itemsize for v in pp.values())
    vmem_limit = int(min(64 * 1024 * 1024,
                         max(32 * 1024 * 1024, 2 * (tile_bytes + weight_bytes))))

    out_full = pl.pallas_call(
        _dqn_kernel,
        out_shape=jax.ShapeDtypeStruct((b_pad, ap), jnp.float32),
        grid=grid,
        in_specs=in_specs,
        out_specs=out_spec,
        compiler_params=pltpu.CompilerParams(
            dimension_semantics=("parallel",),
            vmem_limit_bytes=vmem_limit),
        cost_estimate=pl.CostEstimate(
            flops=flops, transcendentals=0, bytes_accessed=bytes_accessed),
    )(*args)

    return out_full[:B, :num_actions]


# ----------------------------------------------------------------------------
# Param init (mimics nn.Linear: U(-1/sqrt(fan_in), 1/sqrt(fan_in)))
# ----------------------------------------------------------------------------
def init_params(key, in_dim, hidden_dim, num_actions):
    dims = [(in_dim, hidden_dim),
            (hidden_dim, hidden_dim),
            (hidden_dim, hidden_dim),
            (hidden_dim, num_actions)]
    params = {}
    keys = jax.random.split(key, 2 * len(dims))
    for i, (fan_in, fan_out) in enumerate(dims):
        bound = 1.0 / (fan_in ** 0.5)
        params[f"w{i + 1}"] = jax.random.uniform(
            keys[2 * i], (fan_in, fan_out), minval=-bound, maxval=bound,
            dtype=jnp.float32)
        params[f"b{i + 1}"] = jax.random.uniform(
            keys[2 * i + 1], (1, fan_out), minval=-bound, maxval=bound,
            dtype=jnp.float32)
    return params


def _ref_forward_bf16(x, params):
    """Reference with the same bf16-weight / f32-accumulate precision policy."""
    h = x.astype(jnp.bfloat16)
    for i in (1, 2, 3):
        w = params[f"w{i}"].astype(jnp.bfloat16)
        h = jnp.dot(h, w, preferred_element_type=jnp.float32) + params[f"b{i}"]
        h = jnp.maximum(h, 0.0).astype(jnp.bfloat16)
    w4 = params["w4"].astype(jnp.bfloat16)
    return jnp.dot(h, w4, preferred_element_type=jnp.float32) + params["b4"]


if __name__ == "__main__":
    # Small synthetic config: obs_space=16, state_space=8, hidden=32, actions=5.
    obs_space, state_space = 16, 8
    nn_hidden_dim = 32
    num_actions = 5
    batch = 8

    key = jax.random.PRNGKey(0)
    k_params, k_x = jax.random.split(key)

    in_dim = obs_space + state_space
    params = init_params(k_params, in_dim, nn_hidden_dim, num_actions)
    x = jax.random.normal(k_x, (batch, in_dim), dtype=jnp.float32)

    out = dqn_forward(x, params)
    out = jax.block_until_ready(out)

    ref = _ref_forward_bf16(x, params)
    assert out.shape == (batch, num_actions)
    assert jnp.allclose(out, ref, atol=2e-2, rtol=2e-2), (
        jnp.max(jnp.abs(out - ref)))

    print("KERNEL_OK")
</pallas_src>

<mosaic_0001>
module attributes {stable_mosaic.version = 11 : i64} {
  func.func @_dqn_kernel(%arg0: i32, %arg1: memref<16x24xbf16, #tpu.memory_space<vmem>>, %arg2: memref<24x128xbf16, #tpu.memory_space<vmem>>, %arg3: memref<1x128xf32, #tpu.memory_space<vmem>>, %arg4: memref<128x128xbf16, #tpu.memory_space<vmem>>, %arg5: memref<1x128xf32, #tpu.memory_space<vmem>>, %arg6: memref<128x128xbf16, #tpu.memory_space<vmem>>, %arg7: memref<1x128xf32, #tpu.memory_space<vmem>>, %arg8: memref<128x128xbf16, #tpu.memory_space<vmem>>, %arg9: memref<1x128xf32, #tpu.memory_space<vmem>>, %arg10: memref<16x128xf32, #tpu.memory_space<vmem>>) attributes {dimension_semantics = [#tpu.dimension_semantics<parallel>], iteration_bounds = array<i64: 1>, scalar_prefetch = 0 : i64, scratch_operands = 0 : i64, tpu.core_type = #tpu.core_type<tc>, window_params = [{transform_indices = @transform_0, window_bounds = array<i64: 16, 24>}, {pipeline_mode = #tpu.pipeline_mode<synchronous>, transform_indices = @transform_1, window_bounds = array<i64: 24, 128>}, {pipeline_mode = #tpu.pipeline_mode<synchronous>, transform_indices = @transform_2, window_bounds = array<i64: 1, 128>}, {pipeline_mode = #tpu.pipeline_mode<synchronous>, transform_indices = @transform_3, window_bounds = array<i64: 128, 128>}, {pipeline_mode = #tpu.pipeline_mode<synchronous>, transform_indices = @transform_4, window_bounds = array<i64: 1, 128>}, {pipeline_mode = #tpu.pipeline_mode<synchronous>, transform_indices = @transform_5, window_bounds = array<i64: 128, 128>}, {pipeline_mode = #tpu.pipeline_mode<synchronous>, transform_indices = @transform_6, window_bounds = array<i64: 1, 128>}, {pipeline_mode = #tpu.pipeline_mode<synchronous>, transform_indices = @transform_7, window_bounds = array<i64: 128, 128>}, {pipeline_mode = #tpu.pipeline_mode<synchronous>, transform_indices = @transform_8, window_bounds = array<i64: 1, 128>}, {transform_indices = @transform_9, window_bounds = array<i64: 16, 128>}]} {
    %c0 = arith.constant 0 : index
    %c0_0 = arith.constant 0 : index
    %0 = vector.load %arg1[%c0, %c0_0] : memref<16x24xbf16, #tpu.memory_space<vmem>>, vector<16x24xbf16>
    %c0_1 = arith.constant 0 : index
    %c0_2 = arith.constant 0 : index
    %1 = vector.load %arg2[%c0_1, %c0_2] : memref<24x128xbf16, #tpu.memory_space<vmem>>, vector<24x128xbf16>
    %cst = arith.constant dense<0.000000e+00> : vector<16x128xf32>
    %2 = tpu.matmul %0, %1, %cst {dimension_numbers = #tpu.dot_dimension_numbers<[1], [0], [0], [1], [0, 0, 1, 1], [], []>} : vector<16x24xbf16>, vector<24x128xbf16>, vector<16x128xf32> -> vector<16x128xf32>
    %c0_3 = arith.constant 0 : index
    %c0_4 = arith.constant 0 : index
    %3 = vector.load %arg3[%c0_3, %c0_4] : memref<1x128xf32, #tpu.memory_space<vmem>>, vector<1x128xf32>
    %4 = vector.broadcast %3 : vector<1x128xf32> to vector<16x128xf32>
    %5 = arith.addf %2, %4 : vector<16x128xf32>
    %cst_5 = arith.constant 0.000000e+00 : f32
    %6 = vector.broadcast %cst_5 : f32 to vector<16x128xf32>
    %7 = arith.maximumf %5, %6 : vector<16x128xf32>
    %8 = arith.truncf %7 : vector<16x128xf32> to vector<16x128xbf16>
    %c0_6 = arith.constant 0 : index
    %c0_7 = arith.constant 0 : index
    %9 = vector.load %arg4[%c0_6, %c0_7] : memref<128x128xbf16, #tpu.memory_space<vmem>>, vector<128x128xbf16>
    %cst_8 = arith.constant dense<0.000000e+00> : vector<16x128xf32>
    %10 = tpu.matmul %8, %9, %cst_8 {dimension_numbers = #tpu.dot_dimension_numbers<[1], [0], [0], [1], [0, 0, 1, 1], [], []>} : vector<16x128xbf16>, vector<128x128xbf16>, vector<16x128xf32> -> vector<16x128xf32>
    %c0_9 = arith.constant 0 : index
    %c0_10 = arith.constant 0 : index
    %11 = vector.load %arg5[%c0_9, %c0_10] : memref<1x128xf32, #tpu.memory_space<vmem>>, vector<1x128xf32>
    %12 = vector.broadcast %11 : vector<1x128xf32> to vector<16x128xf32>
    %13 = arith.addf %10, %12 : vector<16x128xf32>
    %cst_11 = arith.constant 0.000000e+00 : f32
    %14 = vector.broadcast %cst_11 : f32 to vector<16x128xf32>
    %15 = arith.maximumf %13, %14 : vector<16x128xf32>
    %16 = arith.truncf %15 : vector<16x128xf32> to vector<16x128xbf16>
    %c0_12 = arith.constant 0 : index
    %c0_13 = arith.constant 0 : index
    %17 = vector.load %arg6[%c0_12, %c0_13] : memref<128x128xbf16, #tpu.memory_space<vmem>>, vector<128x128xbf16>
    %cst_14 = arith.constant dense<0.000000e+00> : vector<16x128xf32>
    %18 = tpu.matmul %16, %17, %cst_14 {dimension_numbers = #tpu.dot_dimension_numbers<[1], [0], [0], [1], [0, 0, 1, 1], [], []>} : vector<16x128xbf16>, vector<128x128xbf16>, vector<16x128xf32> -> vector<16x128xf32>
    %c0_15 = arith.constant 0 : index
    %c0_16 = arith.constant 0 : index
    %19 = vector.load %arg7[%c0_15, %c0_16] : memref<1x128xf32, #tpu.memory_space<vmem>>, vector<1x128xf32>
    %20 = vector.broadcast %19 : vector<1x128xf32> to vector<16x128xf32>
    %21 = arith.addf %18, %20 : vector<16x128xf32>
    %cst_17 = arith.constant 0.000000e+00 : f32
    %22 = vector.broadcast %cst_17 : f32 to vector<16x128xf32>
    %23 = arith.maximumf %21, %22 : vector<16x128xf32>
    %24 = arith.truncf %23 : vector<16x128xf32> to vector<16x128xbf16>
    %c0_18 = arith.constant 0 : index
    %c0_19 = arith.constant 0 : index
    %25 = vector.load %arg8[%c0_18, %c0_19] : memref<128x128xbf16, #tpu.memory_space<vmem>>, vector<128x128xbf16>
    %cst_20 = arith.constant dense<0.000000e+00> : vector<16x128xf32>
    %26 = tpu.matmul %24, %25, %cst_20 {dimension_numbers = #tpu.dot_dimension_numbers<[1], [0], [0], [1], [0, 0, 1, 1], [], []>} : vector<16x128xbf16>, vector<128x128xbf16>, vector<16x128xf32> -> vector<16x128xf32>
    %c0_21 = arith.constant 0 : index
    %c0_22 = arith.constant 0 : index
    %27 = vector.load %arg9[%c0_21, %c0_22] : memref<1x128xf32, #tpu.memory_space<vmem>>, vector<1x128xf32>
    %28 = vector.broadcast %27 : vector<1x128xf32> to vector<16x128xf32>
    %29 = arith.addf %26, %28 : vector<16x128xf32>
    %c0_23 = arith.constant 0 : index
    %c0_24 = arith.constant 0 : index
    %30 = vector.load %arg10[%c0_23, %c0_24] : memref<16x128xf32, #tpu.memory_space<vmem>>, vector<16x128xf32>
    tpu.vector_store %arg10[%c0_23, %c0_24], %29 {strides = array<i32>} : memref<16x128xf32, #tpu.memory_space<vmem>>, vector<16x128xf32>,
    return
  }
  func.func @transform_0(%arg0: i32) -> (i32, i32) {
    %c0_i32 = arith.constant 0 : i32
    %c0_i32_0 = arith.constant 0 : i32
    return %arg0, %c0_i32 : i32, i32
  }
  func.func @transform_1(%arg0: i32) -> (i32, i32) {
    %c0_i32 = arith.constant 0 : i32
    %c0_i32_0 = arith.constant 0 : i32
    %c0_i32_1 = arith.constant 0 : i32
    return %c0_i32, %c0_i32_0 : i32, i32
  }
  func.func @transform_2(%arg0: i32) -> (i32, i32) {
    %c0_i32 = arith.constant 0 : i32
    %c0_i32_0 = arith.constant 0 : i32
    %c0_i32_1 = arith.constant 0 : i32
    return %c0_i32, %c0_i32_0 : i32, i32
  }
  func.func @transform_3(%arg0: i32) -> (i32, i32) {
    %c0_i32 = arith.constant 0 : i32
    %c0_i32_0 = arith.constant 0 : i32
    %c0_i32_1 = arith.constant 0 : i32
    return %c0_i32, %c0_i32_0 : i32, i32
  }
  func.func @transform_4(%arg0: i32) -> (i32, i32) {
    %c0_i32 = arith.constant 0 : i32
    %c0_i32_0 = arith.constant 0 : i32
    %c0_i32_1 = arith.constant 0 : i32
    return %c0_i32, %c0_i32_0 : i32, i32
  }
  func.func @transform_5(%arg0: i32) -> (i32, i32) {
    %c0_i32 = arith.constant 0 : i32
    %c0_i32_0 = arith.constant 0 : i32
    %c0_i32_1 = arith.constant 0 : i32
    return %c0_i32, %c0_i32_0 : i32, i32
  }
  func.func @transform_6(%arg0: i32) -> (i32, i32) {
    %c0_i32 = arith.constant 0 : i32
    %c0_i32_0 = arith.constant 0 : i32
    %c0_i32_1 = arith.constant 0 : i32
    return %c0_i32, %c0_i32_0 : i32, i32
  }
  func.func @transform_7(%arg0: i32) -> (i32, i32) {
    %c0_i32 = arith.constant 0 : i32
    %c0_i32_0 = arith.constant 0 : i32
    %c0_i32_1 = arith.constant 0 : i32
    return %c0_i32, %c0_i32_0 : i32, i32
  }
  func.func @transform_8(%arg0: i32) -> (i32, i32) {
    %c0_i32 = arith.constant 0 : i32
    %c0_i32_0 = arith.constant 0 : i32
    %c0_i32_1 = arith.constant 0 : i32
    return %c0_i32, %c0_i32_0 : i32, i32
  }
  func.func @transform_9(%arg0: i32) -> (i32, i32) {
    %c0_i32 = arith.constant 0 : i32
    %c0_i32_0 = arith.constant 0 : i32
    return %arg0, %c0_i32 : i32, i32
  }
}

</mosaic_0001>

<bundles_post_ra>
// kernel: dqn_forward.1
= control target key start
LH: loop header
LB: loop body
LE: loop exit
PB: predicated region body
PF: predicated region fallthrough
CT: control target
= control target key end

     0   :  { %vm60_vm0 = vcmask 1043456   ;;  %vm56_vm1 = vcmask 195584   ;;  %s623_s1 = inlined_call_operand.vmem [shape: bf16[24,128], index: 1, kind: input, shape index: {}]   ;;  %s624_s3 = inlined_call_operand.vmem [shape: bf16[128,128], index: 3, kind: input, shape index: {}]   ;;  %s625_s2 = inlined_call_operand.vmem [shape: f32[1,128], index: 2, kind: input, shape index: {}]   ;;  %s626_s0 = inlined_call_operand.vmem [shape: bf16[16,24], index: 0, kind: input, shape index: {}]   ;;  %s627_s4 = inlined_call_operand.vmem [shape: f32[1,128], index: 4, kind: input, shape index: {}]   ;;  %s628_s5 = inlined_call_operand.vmem [shape: bf16[128,128], index: 5, kind: input, shape index: {}]   ;;  %s629_s6 = inlined_call_operand.vmem [shape: f32[1,128], index: 6, kind: input, shape index: {}]   ;;  %s630_s7 = inlined_call_operand.vmem [shape: bf16[128,128], index: 7, kind: input, shape index: {}]   ;;  %s631_s8 = inlined_call_operand.vmem [shape: f32[1,128], index: 8, kind: input, shape index: {}]   ;;  %s632_s9 = inlined_call_operand.vmem [shape: f32[16,128], index: 9, kind: output, shape index: {}]  }
   0x1   :  { %v37_v0 = vld [vmem:[%s623_s1 + $0x8] sm:$0xf]  ;;  %v453_v2 = vld [vmem:[%s624_s3 + $0x38] sm:$0xff]  ;;  %v452_v4 = vld [vmem:[%s624_s3 + $0x30] sm:$0xff] }
   0x2   :  { %v52_v1 = vunpack.c.l.b16 %v37_v0  ;;  %149 = vmatpush.bf16.msra.mxu1 %v453_v2  ;;  %v445_v6 = vld [vmem:[%s623_s1] sm:$0xff]  ;;  %v451_v7 = vld [vmem:[%s624_s3 + $0x28] sm:$0xff]  ;;  %v449_v10 = vld [vmem:[%s624_s3 + $0x18] sm:$0xff] }
   0x3   :  { %v444_v8 = vld [vmem:[%s626_s0] sm:$0xff]  ;;  %v448_v11 = vld [vmem:[%s624_s3 + $0x10] sm:$0xff]  ;;  %v447_v12 = vld [vmem:[%s624_s3 + $0x8] sm:$0xff] }
   0x4   :  { %v54_v3 = vpack.c.b16 %v52_v1, %v52_v1  ;;  %v450_v9 = vld [vmem:[%s624_s3 + $0x20] sm:$0xff]  ;;  %v461_v14 = vld [vmem:[%s628_s5 + $0x38] sm:$0xff]  ;;  %v460_v15 = vld [vmem:[%s628_s5 + $0x30] sm:$0xff] }
   0x5   :  { %v446_v13 = vld [vmem:[%s624_s3] sm:$0xff]  ;;  %234 = vmatpush.bf16.msra.mxu2 %v461_v14  ;;  %v459_v16 = vld [vmem:[%s628_s5 + $0x28] sm:$0xff]  ;;  %v457_v26 = vld [vmem:[%s628_s5 + $0x18] sm:$0xff] }
   0x6   :  { %v62_v5 = vsel %vm60_vm0, %v54_v3, 0  ;;  %150 = vmatpush.bf16.msra.mxu1 %v452_v4  ;;  %v458_v17 = vld [vmem:[%s628_s5 + $0x20] sm:$0xff]  ;;  %v456_v27 = vld [vmem:[%s628_s5 + $0x10] sm:$0xff]  ;;  %v455_v28 = vld [vmem:[%s628_s5 + $0x8] sm:$0xff] }
   0x7   :  { %70 = vmatpush.bf16.msra.mxu0 %v62_v5  ;;  %v470_v19 = vld [vmem:[%s625_s2] ss:$0 sm:$0xff]  ;;  %v469_v30 = vld [vmem:[%s630_s7 + $0x38] sm:$0xff]  ;;  %v468_v31 = vld [vmem:[%s630_s7 + $0x30] sm:$0xff] }
   0x8   :  { %v454_v29 = vld [vmem:[%s628_s5] sm:$0xff]  ;;  %319 = vmatpush.bf16.msra.mxu3 %v469_v30  ;;  %v467_v32 = vld [vmem:[%s630_s7 + $0x28] sm:$0xff]  ;;  %v465_v42 = vld [vmem:[%s630_s7 + $0x18] sm:$0xff] }
   0x9   :  { %235 = vmatpush.bf16.msra.mxu2 %v460_v15  ;;  %v466_v33 = vld [vmem:[%s630_s7 + $0x20] sm:$0xff]  ;;  %v464_v43 = vld [vmem:[%s630_s7 + $0x10] sm:$0xff]  ;;  %v463_v44 = vld [vmem:[%s630_s7 + $0x8] sm:$0xff] }
   0xa   :  { %151 = vmatpush.bf16.msra.mxu1 %v451_v7  ;;  %v471_v35 = vld [vmem:[%s627_s4] ss:$0 sm:$0xff] }
   0xb   :  { %71 = vmatpush.bf16.msra.mxu0 %v445_v6  ;;  %v462_v45 = vld [vmem:[%s630_s7] sm:$0xff] }
   0xc   :  { %320 = vmatpush.bf16.msra.mxu3 %v468_v31  ;;  %v472_v47 = vld [vmem:[%s629_s6] ss:$0 sm:$0xff] }
   0xd   :  { %236 = vmatpush.bf16.msra.mxu2 %v459_v16  ;;  %v473_v54 = vld [vmem:[%s631_s8] ss:$0 sm:$0xff] }
   0xe   :  { %347 = vmatmul.msk.bf16.vlgmr.msra.gmra.mxu0 %vm56_vm1, %v444_v8  ;;  %152 = vmatpush.bf16.msra.mxu1 %v450_v9 }
  0x10   :  { %321 = vmatpush.bf16.msra.mxu3 %v467_v32 }
  0x11   :  { %237 = vmatpush.bf16.msra.mxu2 %v458_v17 }
  0x12   :  { %153 = vmatpush.bf16.msra.mxu1 %v449_v10 }
  0x14   :  { %322 = vmatpush.bf16.msra.mxu3 %v466_v33 }
  0x15   :  { %238 = vmatpush.bf16.msra.mxu2 %v457_v26 }
  0x16   :  { %154 = vmatpush.bf16.msra.mxu1 %v448_v11 }
  0x18   :  { %323 = vmatpush.bf16.msra.mxu3 %v465_v42 }
  0x19   :  { %239 = vmatpush.bf16.msra.mxu2 %v456_v27 }
  0x1a   :  { %155 = vmatpush.bf16.msra.mxu1 %v447_v12 }
  0x1c   :  { %324 = vmatpush.bf16.msra.mxu3 %v464_v43 }
  0x1d   :  { %240 = vmatpush.bf16.msra.mxu2 %v455_v28 }
  0x1e   :  { %156 = vmatpush.bf16.msra.mxu1 %v446_v13 }
  0x20   :  { %325 = vmatpush.bf16.msra.mxu3 %v463_v44 }
  0x21   :  { %241 = vmatpush.bf16.msra.mxu2 %v454_v29 }
  0x24   :  { %326 = vmatpush.bf16.msra.mxu3 %v462_v45 }
  0x8b   :  { %v73_v18 = vpop.f32.mrf.mxu0 }
  0x8c   :  { %v74_v20 = vadd.f32 %v470_v19, %v73_v18 }
  0x8e   :  { %v78_v23 = vmax.f32 %v74_v20, 0.0 }
  0x93   :  { %v75_v21 = vpop.f32.mrf.mxu0 }
  0x94   :  { %v76_v22 = vadd.f32 %v470_v19, %v75_v21 }
  0x96   :  { %v79_v24 = vmax.f32 %v76_v22, 0.0 }
  0x98   :  { %v80_v25 = vpack.c.bf16 %v79_v24, %v78_v23 }
  0x9a   :  { %157 = vmatmul.bf16.vlgmr.msra.gmra.mxu1 %v80_v25 }
 0x117   :  { %v158_v34 = vpop.f32.mrf.mxu1 }
 0x118   :  { %v159_v36 = vadd.f32 %v471_v35, %v158_v34 }
 0x11a   :  { %v163_v39 = vmax.f32 %v159_v36, 0.0 }
 0x11f   :  { %v160_v37 = vpop.f32.mrf.mxu1 }
 0x120   :  { %v161_v38 = vadd.f32 %v471_v35, %v160_v37 }
 0x122   :  { %v164_v40 = vmax.f32 %v161_v38, 0.0 }
 0x124   :  { %v165_v41 = vpack.c.bf16 %v164_v40, %v163_v39 }
 0x126   :  { %242 = vmatmul.bf16.vlgmr.msra.gmra.mxu2 %v165_v41 }
 0x1a9   :  { %v243_v46 = vpop.f32.mrf.mxu2 }
 0x1aa   :  { %v244_v48 = vadd.f32 %v472_v47, %v243_v46 }
 0x1ac   :  { %v248_v51 = vmax.f32 %v244_v48, 0.0 }
 0x1b1   :  { %v245_v49 = vpop.f32.mrf.mxu2 }
 0x1b2   :  { %v246_v50 = vadd.f32 %v472_v47, %v245_v49 }
 0x1b4   :  { %v249_v52 = vmax.f32 %v246_v50, 0.0 }
 0x1b6   :  { %v250_v53 = vpack.c.bf16 %v249_v52, %v248_v51 }
 0x1b8   :  { %327 = vmatmul.bf16.vlgmr.msra.gmra.mxu3 %v250_v53 }
 0x23b   :  { %v328_v55 = vpop.f32.mrf.mxu3 }
 0x23c   :  { %v329_v56 = vadd.f32 %v473_v54, %v328_v55 }
 0x23e   :  { %333 = vst [vmem:[%s632_s9] sm:$0xff] %v329_v56 }
 0x243   :  { %v330_v57 = vpop.f32.mrf.mxu3 }
 0x244   :  { %v331_v58 = vadd.f32 %v473_v54, %v330_v57 }
 0x246   :  { %334 = vst [vmem:[%s632_s9 + $0x8] sm:$0xff] %v331_v58 }

</bundles_post_ra>
